<compile_context>
chip_gen: v7x
topology: tpu7x:2x2x1
jax: 0.10.0
libtpu: 0.0.40
codegen_flags: <defaults>
</compile_context>

<pallas_src>
import functools

import jax
import jax.numpy as jnp
from jax.experimental import pallas as pl
from jax.experimental.pallas import tpu as pltpu

MAX_TILE_ROWS = 2048   # large row tiles amortize per-grid-step pipeline overhead
ROW_ALIGN = 16         # bf16 sublane packing (also divisible by 8 for f32 output)


def _round_up(x, m):
    return (x + m - 1) // m * m


# --------------------------------- kernel ------------------------------------

def _dcf_kernel(in_pad, hidden_pad, fused_dim,
                x_ref, wg_ref, w1_ref, w2_ref, bias_ref, out_ref):
    """Fused gating + fusion-MLP for one row tile.

    x_ref   (rows, in_pad)          bf16  [feats | cdyn | 0-pad], lane-dense
    wg_ref  (in_pad, in_pad)        bf16  block-diag W_feat, W_cdyn rows, 0 pad
    w1_ref  (in_pad, hidden_pad)    bf16  zero rows past fusion_in
    w2_ref  (hidden_pad, fused_dim) bf16  zero rows past hidden
    bias    (1, in_pad+hidden_pad+fused_dim) f32  [bg | b1 | b2]
    out_ref (rows, fused_dim)       f32
    """
    x16 = x_ref[...]
    bg = bias_ref[:, :in_pad]
    b1 = bias_ref[:, in_pad:in_pad + hidden_pad]
    b2 = bias_ref[:, in_pad + hidden_pad:in_pad + hidden_pad + fused_dim]

    # One packed gate matmul over the full padded slab.  cdyn / pad columns of
    # wg are zero (logits 0 there) and their rows in w1 are zero, so gating the
    # extra lanes is inert — no masked slice needed.
    logits = jnp.dot(x16, wg_ref[...], preferred_element_type=jnp.float32) + bg
    gated = jax.nn.sigmoid(logits) * x16.astype(jnp.float32)

    h = jnp.maximum(
        jnp.dot(gated.astype(jnp.bfloat16), w1_ref[...],
                preferred_element_type=jnp.float32) + b1, 0.0)
    o = jnp.dot(h.astype(jnp.bfloat16), w2_ref[...],
                preferred_element_type=jnp.float32) + b2
    out_ref[...] = jnp.maximum(o, 0.0).astype(out_ref.dtype)


def _run_dcf_kernel(x_slab, packed):
    in_pad = packed["in_pad"]
    hidden_pad = packed["hidden_pad"]
    fused_dim = packed["fused_dim"]
    n_rows = x_slab.shape[0]

    tile_rows = min(MAX_TILE_ROWS, _round_up(max(n_rows, 1), ROW_ALIGN))
    # Prefer >=2 grid steps when there is enough work: a "parallel" grid axis
    # is how work shards across v7x's two TensorCores.
    if tile_rows >= n_rows and n_rows > 2 * ROW_ALIGN:
        tile_rows = min(MAX_TILE_ROWS, _round_up(pl.cdiv(n_rows, 2), ROW_ALIGN))
    rows_p = _round_up(n_rows, tile_rows)
    if rows_p != n_rows:
        x_slab = jnp.pad(x_slab, ((0, rows_p - n_rows), (0, 0)))
    grid = (rows_p // tile_rows,)

    def full_spec(arr):
        return pl.BlockSpec(arr.shape, lambda i: (0, 0))

    kernel = functools.partial(_dcf_kernel, in_pad, hidden_pad, fused_dim)
    out = pl.pallas_call(
        kernel,
        out_shape=jax.ShapeDtypeStruct((rows_p, fused_dim), jnp.float32),
        grid=grid,
        in_specs=[pl.BlockSpec((tile_rows, in_pad), lambda i: (i, 0)),
                  full_spec(packed["wg"]), full_spec(packed["w1"]),
                  full_spec(packed["w2"]), full_spec(packed["bias"])],
        out_specs=pl.BlockSpec((tile_rows, fused_dim), lambda i: (i, 0)),
        compiler_params=pltpu.CompilerParams(
            dimension_semantics=("parallel",),
            vmem_limit_bytes=32 * 1024 * 1024),
    )(x_slab, packed["wg"], packed["w1"], packed["w2"], packed["bias"])
    return out[:n_rows]


# ----------------------- parameter construction (glue) -----------------------

def _init_linear(key, in_dim, out_dim):
    kw, kb = jax.random.split(key)
    bound = 1.0 / (in_dim ** 0.5)
    w = jax.random.uniform(kw, (in_dim, out_dim), jnp.float32, -bound, bound)
    b = jax.random.uniform(kb, (1, out_dim), jnp.float32, -bound, bound)
    return w, b


def make_dcf_params(key, mafe_embed_dims_dict, stga_out_dim, cdyn_dim, fused_dim):
    active = [k for k, d in mafe_embed_dims_dict.items() if d > 0]
    params = {"active_mafe_keys": active, "gates": {}, "fused_dim": fused_dim,
              "cdyn_dim": cdyn_dim}

    src_names, src_params, dims = [], [], []
    fusion_in = 0
    for k in active:
        d = mafe_embed_dims_dict[k]
        key, sub = jax.random.split(key)
        w, b = _init_linear(sub, d + cdyn_dim, d)
        params["gates"][k] = (w[:d], w[d:], b)          # (W_feat, W_cdyn, bias)
        src_names.append(k); src_params.append(params["gates"][k]); dims.append(d)
        fusion_in += d
    params["stga_gate"] = None
    if stga_out_dim > 0:
        key, sub = jax.random.split(key)
        w, b = _init_linear(sub, stga_out_dim + cdyn_dim, stga_out_dim)
        params["stga_gate"] = (w[:stga_out_dim], w[stga_out_dim:], b)
        src_names.append("__stga__"); src_params.append(params["stga_gate"])
        dims.append(stga_out_dim)
        fusion_in += stga_out_dim

    params["is_dummy_fusion"] = fusion_in == 0
    if fusion_in == 0:
        key, kd = jax.random.split(key)
        params["fusion"] = _init_linear(kd, 1, fused_dim)   # dummy Linear(1, fused)
        params["packed"] = None
        return params

    hidden = fused_dim * 2
    key, k1, k2 = jax.random.split(key, 3)
    w1, b1 = _init_linear(k1, fusion_in, hidden)
    w2, b2 = _init_linear(k2, hidden, fused_dim)
    params["fusion"] = (w1, b1, w2, b2)

    # ---------- host-side packing of 4 lane-dense kernel slabs ----------
    offs = [0]
    for d in dims:
        offs.append(offs[-1] + d)
    in_dim = fusion_in + cdyn_dim
    in_pad = _round_up(in_dim, 128)          # padded input slab lanes
    hidden_pad = _round_up(hidden, 128)      # padded hidden lanes

    wg = jnp.zeros((in_pad, in_pad), jnp.float32)
    bg = jnp.zeros((1, in_pad), jnp.float32)
    for i, (wf, wc, b) in enumerate(src_params):
        o, d = offs[i], dims[i]
        wg = wg.at[o:o + d, o:o + d].set(wf)                      # block-diag W_feat
        wg = wg.at[fusion_in:fusion_in + cdyn_dim, o:o + d].set(wc)  # W_cdyn rows
        bg = bg.at[:, o:o + d].set(b)
    # columns >= fusion_in of wg stay zero -> gate logits 0 on cdyn/pad lanes

    w1p = (jnp.zeros((in_pad, hidden_pad), jnp.float32)
           .at[:fusion_in, :hidden].set(w1))     # zero rows kill cdyn/pad lanes
    w2p = (jnp.zeros((hidden_pad, fused_dim), jnp.float32)
           .at[:hidden, :].set(w2))

    bias = jnp.zeros((1, in_pad + hidden_pad + fused_dim), jnp.float32)
    bias = bias.at[:, :in_pad].set(bg)
    bias = bias.at[:, in_pad:in_pad + hidden].set(b1)
    bias = bias.at[:, in_pad + hidden_pad:].set(b2)

    params["packed"] = dict(
        src_order=tuple(src_names), dims=tuple(dims),
        fusion_in=fusion_in, hidden=hidden,
        in_pad=in_pad, hidden_pad=hidden_pad, fused_dim=fused_dim,
        wg=wg.astype(jnp.bfloat16),
        w1=w1p.astype(jnp.bfloat16),
        w2=w2p.astype(jnp.bfloat16),
        bias=bias)
    return params


# ------------------------------ forward (glue) -------------------------------

def dcf_forward(params, mafe_outputs_dict, stga_output, cdyn_vector, num_stations):
    B = cdyn_vector.shape[0]
    S = num_stations
    fused_dim = params["fused_dim"]

    feats, names = [], []
    for k in params["active_mafe_keys"]:
        feat = mafe_outputs_dict.get(k)
        if feat is None:
            continue
        if feat.ndim == 2:
            feat = jnp.broadcast_to(feat[:, None, :], (B, S, feat.shape[-1]))
        elif not (feat.ndim == 3 and feat.shape[1] == S):
            raise ValueError(f"Unexpected MAFE shape '{k}': {feat.shape}")
        feats.append(feat.reshape(B * S, feat.shape[-1]))
        names.append(k)

    if (params["stga_gate"] is not None and stga_output is not None
            and stga_output.size > 0):
        feats.append(stga_output.reshape(B * S, stga_output.shape[-1]))
        names.append("__stga__")

    if not feats:
        # Fallback branches of the reference module (no gated features): these
        # are constant broadcasts, no kernel needed.
        if params["is_dummy_fusion"]:
            _, b = params["fusion"]                      # Linear(1, fused) on zeros
            return jnp.broadcast_to(jnp.maximum(b, 0.0)[None], (B, S, fused_dim))
        return jnp.zeros((B, S, fused_dim), jnp.float32)

    packed = params["packed"]
    if packed is None or tuple(names) != packed["src_order"]:
        # The reference PyTorch module would hit a shape mismatch here too.
        raise ValueError("Provided feature sources do not match configured gates.")

    cdyn_dim = params["cdyn_dim"]
    cdyn_flat = jnp.broadcast_to(
        cdyn_vector[:, None, :], (B, S, cdyn_dim)).reshape(B * S, cdyn_dim)

    # One lane-dense bf16 slab [feats... | cdyn | 0-pad] for the kernel; the
    # broadcast/reshape/concat/pad all fuse into a single XLA copy pass.
    # TODO(synk): per-batch (2-D) sources are still broadcast to B*S rows here;
    # computing their W1 partial on B rows only is possible but skipped.
    in_dim = packed["fusion_in"] + cdyn_dim
    x = jnp.concatenate([f.astype(jnp.float32) for f in feats]
                        + [cdyn_flat.astype(jnp.float32)], axis=-1)
    x = jnp.pad(x, ((0, 0), (0, packed["in_pad"] - in_dim))).astype(jnp.bfloat16)

    out = _run_dcf_kernel(x, packed)                     # (B*S, fused_dim) f32
    return out.reshape(B, S, fused_dim)


# --------------------------- pure-JAX reference ------------------------------

def _dcf_reference(params, mafe_outputs_dict, stga_output, cdyn_vector, num_stations):
    B = cdyn_vector.shape[0]
    S = num_stations
    cdyn_exp = jnp.broadcast_to(cdyn_vector[:, None, :],
                                (B, S, cdyn_vector.shape[-1]))
    gated = []
    for k in params["active_mafe_keys"]:
        feat = mafe_outputs_dict[k]
        if feat.ndim == 2:
            feat = jnp.broadcast_to(feat[:, None, :], (B, S, feat.shape[-1]))
        wf, wc, bg = params["gates"][k]
        w = jnp.concatenate([wf, wc], axis=0)
        gi = jnp.concatenate([feat, cdyn_exp], axis=-1)
        gated.append(jax.nn.sigmoid(gi @ w + bg) * feat)
    if params["stga_gate"] is not None:
        wf, wc, bg = params["stga_gate"]
        w = jnp.concatenate([wf, wc], axis=0)
        gi = jnp.concatenate([stga_output, cdyn_exp], axis=-1)
        gated.append(jax.nn.sigmoid(gi @ w + bg) * stga_output)
    x = jnp.concatenate(gated, axis=-1)
    w1, b1, w2, b2 = params["fusion"]
    h = jnp.maximum(x @ w1 + b1, 0.0)
    return jnp.maximum(h @ w2 + b2, 0.0)


if __name__ == "__main__":
    key = jax.random.PRNGKey(0)

    mafe_embed_dims_dict = {"poi": 16, "weather": 32, "unused": 0}
    stga_out_dim, cdyn_dim, fused_dim = 32, 8, 32

    key, kp = jax.random.split(key)
    params = make_dcf_params(kp, mafe_embed_dims_dict, stga_out_dim,
                             cdyn_dim, fused_dim)

    # Two shapes: tiny single-tile grid, and one that exercises row padding +
    # a multi-step ("parallel") grid.
    for (B, num_stations) in [(2, 8), (3, 40)]:
        key, k1, k2, k3, k4 = jax.random.split(key, 5)
        mafe_outputs = {
            "poi": jax.random.normal(k1, (B, 16), jnp.float32),                    # 2-D branch
            "weather": jax.random.normal(k2, (B, num_stations, 32), jnp.float32),  # 3-D branch
        }
        stga_output = jax.random.normal(k3, (B, num_stations, stga_out_dim),
                                        jnp.float32)
        cdyn_vector = jax.random.normal(k4, (B, cdyn_dim), jnp.float32)

        out = dcf_forward(params, mafe_outputs, stga_output, cdyn_vector,
                          num_stations)
        out = jax.block_until_ready(out)
        assert out.shape == (B, num_stations, fused_dim)

        ref = _dcf_reference(params, mafe_outputs, stga_output, cdyn_vector,
                             num_stations)
        max_err = float(jnp.max(jnp.abs(out - ref)))
        assert jnp.allclose(out, ref, rtol=2e-2, atol=2e-2), f"max abs err {max_err}"

    print("KERNEL_OK")
</pallas_src>

<mosaic_0001>
module attributes {stable_mosaic.version = 11 : i64} {
  func.func @_dcf_kernel(%arg0: i32, %arg1: memref<16x128xbf16, #tpu.memory_space<vmem>>, %arg2: memref<128x128xbf16, #tpu.memory_space<vmem>>, %arg3: memref<128x128xbf16, #tpu.memory_space<vmem>>, %arg4: memref<128x32xbf16, #tpu.memory_space<vmem>>, %arg5: memref<1x288xf32, #tpu.memory_space<vmem>>, %arg6: memref<16x32xf32, #tpu.memory_space<vmem>>) attributes {dimension_semantics = [#tpu.dimension_semantics<parallel>], iteration_bounds = array<i64: 1>, scalar_prefetch = 0 : i64, scratch_operands = 0 : i64, tpu.core_type = #tpu.core_type<tc>, window_params = [{transform_indices = @transform_0, window_bounds = array<i64: 16, 128>}, {pipeline_mode = #tpu.pipeline_mode<synchronous>, transform_indices = @transform_1, window_bounds = array<i64: 128, 128>}, {pipeline_mode = #tpu.pipeline_mode<synchronous>, transform_indices = @transform_2, window_bounds = array<i64: 128, 128>}, {pipeline_mode = #tpu.pipeline_mode<synchronous>, transform_indices = @transform_3, window_bounds = array<i64: 128, 32>}, {pipeline_mode = #tpu.pipeline_mode<synchronous>, transform_indices = @transform_4, window_bounds = array<i64: 1, 288>}, {transform_indices = @transform_5, window_bounds = array<i64: 16, 32>}]} {
    %c0 = arith.constant 0 : index
    %c0_0 = arith.constant 0 : index
    %0 = vector.load %arg1[%c0, %c0_0] : memref<16x128xbf16, #tpu.memory_space<vmem>>, vector<16x128xbf16>
    %c0_1 = arith.constant 0 : index
    %c0_2 = arith.constant 0 : index
    %1 = vector.load %arg5[%c0_1, %c0_2] : memref<1x288xf32, #tpu.memory_space<vmem>>, vector<1x128xf32>
    %c0_3 = arith.constant 0 : index
    %c128 = arith.constant 128 : index
    %2 = vector.load %arg5[%c0_3, %c128] : memref<1x288xf32, #tpu.memory_space<vmem>>, vector<1x128xf32>
    %c0_4 = arith.constant 0 : index
    %c256 = arith.constant 256 : index
    %3 = vector.load %arg5[%c0_4, %c256] : memref<1x288xf32, #tpu.memory_space<vmem>>, vector<1x32xf32>
    %c0_5 = arith.constant 0 : index
    %c0_6 = arith.constant 0 : index
    %4 = vector.load %arg2[%c0_5, %c0_6] : memref<128x128xbf16, #tpu.memory_space<vmem>>, vector<128x128xbf16>
    %cst = arith.constant dense<0.000000e+00> : vector<16x128xf32>
    %5 = tpu.matmul %0, %4, %cst {dimension_numbers = #tpu.dot_dimension_numbers<[1], [0], [0], [1], [0, 0, 1, 1], [], []>} : vector<16x128xbf16>, vector<128x128xbf16>, vector<16x128xf32> -> vector<16x128xf32>
    %6 = vector.broadcast %1 : vector<1x128xf32> to vector<16x128xf32>
    %7 = arith.addf %5, %6 : vector<16x128xf32>
    %8 = arith.negf %7 : vector<16x128xf32>
    %9 = math.exp %8 : vector<16x128xf32>
    %cst_7 = arith.constant 1.000000e+00 : f32
    %10 = vector.broadcast %cst_7 : f32 to vector<16x128xf32>
    %11 = arith.addf %10, %9 : vector<16x128xf32>
    %12 = arith.divf %10, %11 : vector<16x128xf32>
    %13 = arith.extf %0 : vector<16x128xbf16> to vector<16x128xf32>
    %14 = arith.mulf %12, %13 : vector<16x128xf32>
    %15 = arith.truncf %14 : vector<16x128xf32> to vector<16x128xbf16>
    %c0_8 = arith.constant 0 : index
    %c0_9 = arith.constant 0 : index
    %16 = vector.load %arg3[%c0_8, %c0_9] : memref<128x128xbf16, #tpu.memory_space<vmem>>, vector<128x128xbf16>
    %cst_10 = arith.constant dense<0.000000e+00> : vector<16x128xf32>
    %17 = tpu.matmul %15, %16, %cst_10 {dimension_numbers = #tpu.dot_dimension_numbers<[1], [0], [0], [1], [0, 0, 1, 1], [], []>} : vector<16x128xbf16>, vector<128x128xbf16>, vector<16x128xf32> -> vector<16x128xf32>
    %18 = vector.broadcast %2 : vector<1x128xf32> to vector<16x128xf32>
    %19 = arith.addf %17, %18 : vector<16x128xf32>
    %cst_11 = arith.constant 0.000000e+00 : f32
    %20 = vector.broadcast %cst_11 : f32 to vector<16x128xf32>
    %21 = arith.maximumf %19, %20 : vector<16x128xf32>
    %22 = arith.truncf %21 : vector<16x128xf32> to vector<16x128xbf16>
    %c0_12 = arith.constant 0 : index
    %c0_13 = arith.constant 0 : index
    %23 = vector.load %arg4[%c0_12, %c0_13] : memref<128x32xbf16, #tpu.memory_space<vmem>>, vector<128x32xbf16>
    %cst_14 = arith.constant dense<0.000000e+00> : vector<16x32xf32>
    %24 = tpu.matmul %22, %23, %cst_14 {dimension_numbers = #tpu.dot_dimension_numbers<[1], [0], [0], [1], [0, 0, 1, 1], [], []>} : vector<16x128xbf16>, vector<128x32xbf16>, vector<16x32xf32> -> vector<16x32xf32>
    %25 = vector.broadcast %3 : vector<1x32xf32> to vector<16x32xf32>
    %26 = arith.addf %24, %25 : vector<16x32xf32>
    %cst_15 = arith.constant 0.000000e+00 : f32
    %27 = vector.broadcast %cst_15 : f32 to vector<16x32xf32>
    %28 = arith.maximumf %26, %27 : vector<16x32xf32>
    %c0_16 = arith.constant 0 : index
    %c0_17 = arith.constant 0 : index
    %29 = vector.load %arg6[%c0_16, %c0_17] : memref<16x32xf32, #tpu.memory_space<vmem>>, vector<16x32xf32>
    tpu.vector_store %arg6[%c0_16, %c0_17], %28 {strides = array<i32>} : memref<16x32xf32, #tpu.memory_space<vmem>>, vector<16x32xf32>,
    return
  }
  func.func @transform_0(%arg0: i32) -> (i32, i32) {
    %c0_i32 = arith.constant 0 : i32
    %c0_i32_0 = arith.constant 0 : i32
    return %arg0, %c0_i32 : i32, i32
  }
  func.func @transform_1(%arg0: i32) -> (i32, i32) {
    %c0_i32 = arith.constant 0 : i32
    %c0_i32_0 = arith.constant 0 : i32
    %c0_i32_1 = arith.constant 0 : i32
    return %c0_i32, %c0_i32_0 : i32, i32
  }
  func.func @transform_2(%arg0: i32) -> (i32, i32) {
    %c0_i32 = arith.constant 0 : i32
    %c0_i32_0 = arith.constant 0 : i32
    %c0_i32_1 = arith.constant 0 : i32
    return %c0_i32, %c0_i32_0 : i32, i32
  }
  func.func @transform_3(%arg0: i32) -> (i32, i32) {
    %c0_i32 = arith.constant 0 : i32
    %c0_i32_0 = arith.constant 0 : i32
    %c0_i32_1 = arith.constant 0 : i32
    return %c0_i32, %c0_i32_0 : i32, i32
  }
  func.func @transform_4(%arg0: i32) -> (i32, i32) {
    %c0_i32 = arith.constant 0 : i32
    %c0_i32_0 = arith.constant 0 : i32
    %c0_i32_1 = arith.constant 0 : i32
    return %c0_i32, %c0_i32_0 : i32, i32
  }
  func.func @transform_5(%arg0: i32) -> (i32, i32) {
    %c0_i32 = arith.constant 0 : i32
    %c0_i32_0 = arith.constant 0 : i32
    return %arg0, %c0_i32 : i32, i32
  }
}

</mosaic_0001>

<bundles_post_ra>
// kernel: tpu_custom_call.1
= control target key start
LH: loop header
LB: loop body
LE: loop exit
PB: predicated region body
PF: predicated region fallthrough
CT: control target
= control target key end

     0   :  { %10 = vsyncpa [#allocation3], 0  ;;  %s786_s0 = inlined_call_operand.vmem [shape: bf16[16,128], index: 0, kind: input, shape index: {}]   ;;  %s787_s1 = inlined_call_operand.vmem [shape: bf16[128,128], index: 1, kind: input, shape index: {}]   ;;  %s788_s2 = inlined_call_operand.hbm [shape: bf16[128,128], index: 2, kind: input, shape index: {}]   ;;  %s789_s3 = inlined_call_operand.vmem [shape: bf16[128,32], index: 3, kind: input, shape index: {}]   ;;  %s790_s4 = inlined_call_operand.vmem [shape: f32[1,288], index: 4, kind: input, shape index: {}]   ;;  %s791_s5 = inlined_call_operand.hbm [shape: f32[16,32], index: 5, kind: output, shape index: {}]  }
   0x1   :  { %11 = vsyncpa [#allocation4], 0  ;;  %s629_s18 = smov [#allocation2]   ;;  %s581_s22 = scalar_lea.hbm %s788_s2, 1024 }
   0x2   :  { %s21_s19 = sshll.u32 %s629_s18, 4  ;;  %p582_p0 = scmp.ne.s32.totalorder %s788_s2, %s581_s22  ;;  %s22_s19 = int_to_ptr.vmem [resolvable:$true] %s21_s19 }
   0x3   :  { %p585_p1 = scmp.lt.u32.totalorder %s581_s22, %s788_s2 }
   0x5   :  { %p587_p2 = pnand %p585_p1, %p582_p0 }
   0x7   :  { %590 = shalt.err (!%p587_p2)
}
   0x8   :  { %s591_s27 = scalar_lea.vmem %s22_s19, 1024  ;;  %p596_p4 = scmp.lt.s32.totalorder %s22_s19, %s22_s19 }
   0x9   :  { %p592_p3 = scmp.ne.s32.totalorder %s22_s19, %s591_s27  ;;  %p597_p5 = scmp.lt.s32.totalorder %s591_s27, %s591_s27 }
   0xb   :  { %p598_p6 = por %p597_p5, %p596_p4 }
   0xd   :  { %p599_p7 = pnand %p598_p6, %p592_p3 }
   0xf   :  { %602 = shalt.err (!%p599_p7)
}
  0x10   :  { %s630_s28 = smov 64   ;;  %s631_s29 = smov 4  }
  0x11   :  { %27 = dma.hbm_to_vmem [thread:$0]  %s788_s2, 1024, %s22_s19, [#allocation3], %s630_s28, %s630_s28, %s631_s29  }
  0x12   :  { %625 = dma.done.wait [#allocation3], 1024  }
  0x13   :  { %626 = vsyncadd [#allocation3], 4294966272  ;;  %v632_v0 = vmov 0.0   ;;  %vm633_vm0 = vmmov 0   ;;  %v547_v1 = vld [vmem:[%s787_s1] sm:$0xff]   ;;  %v548_v2 = vld [vmem:[%s787_s1 + $0x8] sm:$0xff]  }
  0x14   :  { %479 = vmatprep.subr.bf16.mxu0 %v632_v0  ;;  %495 = vmatprep.mubr.msk.bf16.mxu0 %vm633_vm0, %v632_v0  ;;  %v549_v3 = vld [vmem:[%s787_s1 + $0x10] sm:$0xff]   ;;  %v550_v4 = vld [vmem:[%s787_s1 + $0x18] sm:$0xff]   ;;  %v551_v5 = vld [vmem:[%s787_s1 + $0x20] sm:$0xff]   ;;  %vm402_vm1 = vcmask 261120  }
  0x15   :  { %499 = vmatprep.subr.bf16.mxu1 %v632_v0  ;;  %515 = vmatprep.mubr.msk.bf16.mxu1 %vm633_vm0, %v632_v0  ;;  %v552_v6 = vld [vmem:[%s787_s1 + $0x28] sm:$0xff]   ;;  %v553_v7 = vld [vmem:[%s787_s1 + $0x30] sm:$0xff]   ;;  %v554_v8 = vld [vmem:[%s787_s1 + $0x38] sm:$0xff]  }
  0x16   :  { %480 = vmatpush3.bf16.msra.mxu0 %v547_v1  ;;  %v718_v9 = vld [vmem:[%s786_s0] sm:$0xff]   ;;  %v557_v11 = vld [vmem:[#allocation2 + $0x8] sm:$0xff]   ;;  %v558_v12 = vld [vmem:[#allocation2 + $0x10] sm:$0xff]  }
  0x17   :  { %481 = vmatprep.subr.bf16.mxu0 %v632_v0  ;;  %v556_v10 = vld [vmem:[#allocation2] sm:$0xff]   ;;  %v559_v13 = vld [vmem:[#allocation2 + $0x18] sm:$0xff]   ;;  %v561_v15 = vld [vmem:[#allocation2 + $0x28] sm:$0xff]   ;;  %v170_v37 = vunpack.c.l.bf16 %v718_v9  ;;  %v171_v38 = vunpack.c.h.bf16 %v718_v9 }
  0x18   :  { %500 = vmatpush3.bf16.msra.mxu1 %v556_v10  ;;  %v560_v14 = vld [vmem:[#allocation2 + $0x20] sm:$0xff]   ;;  %v562_v16 = vld [vmem:[#allocation2 + $0x30] sm:$0xff]   ;;  %v563_v17 = vld [vmem:[#allocation2 + $0x38] sm:$0xff]  }
  0x19   :  { %501 = vmatprep.subr.bf16.mxu1 %v632_v0  ;;  %v564_v18 = vld [vmem:[%s789_s3] sm:$0xff]   ;;  %v565_v19 = vld [vmem:[%s789_s3 + $0x8] sm:$0xff]   ;;  %v566_v20 = vld [vmem:[%s789_s3 + $0x10] sm:$0xff]  }
  0x1a   :  { %482 = vmatpush3.bf16.msra.mxu0 %v548_v2  ;;  %v567_v21 = vld [vmem:[%s789_s3 + $0x18] sm:$0xff]   ;;  %v568_v22 = vld [vmem:[%s789_s3 + $0x20] sm:$0xff]   ;;  %v569_v23 = vld [vmem:[%s789_s3 + $0x28] sm:$0xff]  }
  0x1b   :  { %483 = vmatprep.subr.bf16.mxu0 %v632_v0  ;;  %v422_v24 = vld [vmem:[%s790_s4] ss:$0 sm:$0xff]  ;;  %v570_v44 = vld [vmem:[%s789_s3 + $0x30] sm:$0xff]   ;;  %v571_v45 = vld [vmem:[%s789_s3 + $0x38] sm:$0xff]   ;;  %s634_s3 = smov [#allocation5]  }
  0x1c   :  { %502 = vmatpush3.bf16.msra.mxu1 %v557_v11  ;;  %v434_v46 = vld [vmem:[%s790_s4 + $0x1] ss:$0 sm:$0xff]  ;;  %v443_v56 = vld [vmem:[%s790_s4 + $0x2] ss:$0 sm:$0xff]  ;;  %s410_s18 = sshll.u32 %s634_s3, 4  ;;  %s411_s18 = int_to_ptr.vmem [resolvable:$true] %s410_s18 }
  0x1d   :  { %503 = vmatprep.subr.bf16.mxu1 %v632_v0  ;;  %s603_s19 = scalar_lea.vmem %s411_s18, 256  ;;  %p608_p9 = scmp.lt.s32.totalorder %s411_s18, %s411_s18 }
  0x1e   :  { %484 = vmatpush3.bf16.msra.mxu0 %v549_v3  ;;  %p604_p8 = scmp.ne.s32.totalorder %s411_s18, %s603_s19  ;;  %p609_p10 = scmp.lt.s32.totalorder %s603_s19, %s603_s19 }
  0x1f   :  { %485 = vmatprep.subr.bf16.mxu0 %v632_v0 }
  0x20   :  { %504 = vmatpush3.bf16.msra.mxu1 %v558_v12  ;;  %p610_p11 = por %p609_p10, %p608_p9 }
  0x21   :  { %505 = vmatprep.subr.bf16.mxu1 %v632_v0 }
  0x22   :  { %486 = vmatpush3.bf16.msra.mxu0 %v550_v4  ;;  %p611_p12 = pnand %p610_p11, %p604_p8 }
  0x23   :  { %487 = vmatprep.subr.bf16.mxu0 %v632_v0 }
  0x24   :  { %506 = vmatpush3.bf16.msra.mxu1 %v559_v13 }
  0x25   :  { %507 = vmatprep.subr.bf16.mxu1 %v632_v0 }
  0x26   :  { %488 = vmatpush3.bf16.msra.mxu0 %v551_v5 }
  0x27   :  { %489 = vmatprep.subr.bf16.mxu0 %v632_v0 }
  0x28   :  { %508 = vmatpush3.bf16.msra.mxu1 %v560_v14 }
  0x29   :  { %509 = vmatprep.subr.bf16.mxu1 %v632_v0 }
  0x2a   :  { %490 = vmatpush3.bf16.msra.mxu0 %v552_v6 }
  0x2b   :  { %491 = vmatprep.subr.bf16.mxu0 %v632_v0 }
  0x2c   :  { %510 = vmatpush3.bf16.msra.mxu1 %v561_v15 }
  0x2d   :  { %511 = vmatprep.subr.bf16.mxu1 %v632_v0 }
  0x2e   :  { %492 = vmatpush3.bf16.msra.mxu0 %v553_v7 }
  0x2f   :  { %493 = vmatprep.subr.bf16.mxu0 %v632_v0 }
  0x30   :  { %512 = vmatpush3.bf16.msra.mxu1 %v562_v16 }
  0x31   :  { %513 = vmatprep.subr.bf16.mxu1 %v632_v0 }
  0x32   :  { %494 = vmatpush3.bf16.msra.mxu0 %v554_v8 }
  0x33   :  { %519 = vmatprep.subr.bf16.mxu0 %v632_v0 }
  0x34   :  { %514 = vmatpush3.bf16.msra.mxu1 %v563_v17 }
  0x35   :  { %496 = vmatmul.mubr.bf16.vlgmr.msra.gmra.mrb[0].mxu0 %v718_v9 }
  0x36   :  { %535 = vmatprep.mubr.msk.bf16.mxu0 %vm633_vm0, %v632_v0  ;;  %520 = vmatpush3.bf16.msra.mxu0 %v564_v18 }
  0x37   :  { %521 = vmatprep.subr.bf16.mxu0 %v632_v0 }
  0x3a   :  { %522 = vmatpush3.bf16.msra.mxu0 %v565_v19 }
  0x3b   :  { %523 = vmatprep.subr.bf16.mxu0 %v632_v0 }
  0x3e   :  { %524 = vmatpush3.bf16.msra.mxu0 %v566_v20 }
  0x3f   :  { %525 = vmatprep.subr.bf16.mxu0 %v632_v0 }
  0x42   :  { %526 = vmatpush3.bf16.msra.mxu0 %v567_v21 }
  0x43   :  { %527 = vmatprep.subr.bf16.mxu0 %v632_v0 }
  0x46   :  { %528 = vmatpush3.bf16.msra.mxu0 %v568_v22 }
  0x47   :  { %529 = vmatprep.subr.bf16.mxu0 %v632_v0 }
  0x4a   :  { %530 = vmatpush3.bf16.msra.mxu0 %v569_v23 }
  0x4b   :  { %531 = vmatprep.subr.bf16.mxu0 %v632_v0 }
  0x4e   :  { %532 = vmatpush3.bf16.msra.mxu0 %v570_v44 }
  0x4f   :  { %533 = vmatprep.subr.bf16.mxu0 %v632_v0 }
  0x52   :  { %534 = vmatpush3.bf16.msra.mxu0 %v571_v45 }
 0x108   :  { %v151_v25 = vpop.f32.mrb[0].mxu0 }
 0x109   :  { %v152_v26 = vadd.f32 %v422_v24, %v151_v25  ;;  %v497_v27 = vpop.f32.mrb[1].mxu0 }
 0x10a   :  { %v154_v28 = vpop.f32.mrb[2].mxu0 }
 0x10b   :  { %v432_v29 = vmul.f32 -1.442695, %v152_v26  ;;  %v155_v30 = vadd.f32 %v422_v24, %v154_v28  ;;  %v498_v31 = vpop.f32.mrb[3].mxu0 }
 0x10d   :  { %573 = vpow2.f32 %v432_v29  ;;  %v433_v32 = vmul.f32 -1.442695, %v155_v30 }
 0x10f   :  { %575 = vpow2.f32 %v433_v32 }
 0x117   :  { %v574_v33 = vpop.eup %573 }
 0x118   :  { %v164_v34 = vadd.f32 1.0, %v574_v33 }
 0x119   :  { %v576_v35 = vpop.eup %575 }
 0x11a   :  { %577 = vrcp.f32 %v164_v34  ;;  %v165_v36 = vadd.f32 1.0, %v576_v35 }
 0x11c   :  { %579 = vrcp.f32 %v165_v36 }
 0x124   :  { %v578_v39 = vpop.eup %577 }
 0x125   :  { %v172_v40 = vmul.f32 %v578_v39, %v170_v37 }
 0x126   :  { %v580_v41 = vpop.eup %579 }
 0x127   :  { %v173_v42 = vmul.f32 %v580_v41, %v171_v38 }
 0x129   :  { %v174_v43 = vpack.c.bf16 %v173_v42, %v172_v40 }
 0x12b   :  { %516 = vmatmul.mubr.bf16.vlgmr.msra.gmra.mrb[0].mxu1 %v174_v43 }
 0x1fe   :  { %v279_v47 = vpop.f32.mrb[0].mxu1 }
 0x1ff   :  { %v280_v48 = vadd.f32 %v434_v46, %v279_v47  ;;  %v517_v49 = vpop.f32.mrb[1].mxu1 }
 0x200   :  { %v282_v50 = vpop.f32.mrb[2].mxu1 }
 0x201   :  { %v283_v51 = vadd.f32 %v434_v46, %v282_v50  ;;  %v518_v52 = vpop.f32.mrb[3].mxu1  ;;  %v286_v53 = vmax.f32 %v280_v48, 0.0 }
 0x203   :  { %v287_v54 = vmax.f32 %v283_v51, 0.0 }
 0x205   :  { %v288_v55 = vpack.c.bf16 %v287_v54, %v286_v53 }
 0x207   :  { %536 = vmatmul.mubr.bf16.vlgmr.msra.gmra.mrb[4].mxu0 %v288_v55 }
 0x2da   :  { %v393_v57 = vpop.f32.mrb[4].mxu0 }
 0x2db   :  { %v394_v58 = vadd.f32 %v443_v56, %v393_v57  ;;  %v537_v59 = vpop.f32.mrb[5].mxu0 }
 0x2dc   :  { %v396_v60 = vpop.f32.mrb[6].mxu0 }
 0x2dd   :  { %v400_v61 = vmax.f32 %v394_v58, 0.0  ;;  %v397_v62 = vadd.f32 %v443_v56, %v396_v60  ;;  %v538_v63 = vpop.f32.mrb[7].mxu0 }
 0x2df   :  { %403 = vst.msk [vmem:[#allocation5] sm:$0xff] %vm402_vm1, %v400_v61  ;;  %v401_v0 = vmax.f32 %v397_v62, 0.0 }
 0x2e1   :  { %404 = vst.msk [vmem:[#allocation5 + $0x8] sm:$0xff] %vm402_vm1, %v401_v0 }
 0x2e2   :  { %614 = shalt.err (!%p611_p12)
}
 0x2e3   :  { %s615_s21 = scalar_lea.hbm %s791_s5, 256 }
 0x2e4   :  { %p616_p13 = scmp.ne.s32.totalorder %s791_s5, %s615_s21  ;;  %p619_p0 = scmp.lt.u32.totalorder %s615_s21, %s791_s5 }
 0x2e6   :  { %p621_p1 = pnand %p619_p0, %p616_p13 }
 0x2e8   :  { %624 = shalt.err (!%p621_p1)
}
 0x2e9   :  { %s635_s24 = smov 128   ;;  %s636_s25 = smov 8  }
 0x2ea   :  { %416 = dma.vmem_to_hbm [thread:$0]  %s411_s18, 256, %s791_s5, [#allocation4], %s635_s24, %s635_s24, %s636_s25  }
 0x2eb   :  { %627 = dma.done.wait [#allocation4], 256  }
 0x2ec   :  { %628 = vsyncadd [#allocation4], 4294967040 }
 0x2ed   :  { %420 = vsyncpa [#allocation3], 1 }
 0x2ee   :  { %421 = vsyncpa [#allocation4], 1 }

</bundles_post_ra>
